<compile_context>
chip_gen: v5e
topology: v5e:2x2
jax: 0.10.0
libtpu: 0.0.40
codegen_flags: <defaults>
</compile_context>

<pallas_src>
import functools
import math

import jax
import jax.numpy as jnp
from jax.experimental import pallas as pl
from jax.experimental.pallas import tpu as pltpu


def _lora_conv1d_kernel(x_ref, w_ref, b_ref, o_ref, *, kernel_size, stride,
                        dilation):
    """One batch sample per grid step.

    x_ref : (C_in, L_pad)        padded input row (VMEM)
    w_ref : (K, C_out, C_in)     folded effective weight, resident across grid
    b_ref : (C_out, 1)           bias column, resident across grid
    o_ref : (C_out, L_out)       output row (lane axis = L_out)
    """
    c_out, l_out = o_ref.shape
    x = x_ref[...]                                   # load once: (C_in, L_pad)
    acc = jnp.zeros((c_out, l_out), jnp.float32)
    # K is a small static int -> unrolled at trace time.
    for k in range(kernel_size):
        start = k * dilation
        end = start + (l_out - 1) * stride + 1
        xs = x[:, start:end:stride]                  # (C_in, L_out) tap slice
        acc = acc + jnp.dot(w_ref[k], xs,
                            preferred_element_type=jnp.float32)
    o_ref[...] = (acc + b_ref[...]).astype(o_ref.dtype)


def lora_conv1d_forward(x, w_orig, b_orig, w_a, w_b, *,
                        stride=1, padding=0, dilation=1, scaling=4.0):
    """
    x      : (N, C_in, L)          -- NCL, torch layout
    w_orig : (C_out, C_in, K)      -- frozen Conv1d weight
    b_orig : (C_out,)              -- frozen Conv1d bias
    w_a    : (r, C_in, K)          -- lora_A Conv1d weight
    w_b    : (C_out, r, 1)         -- lora_B 1x1 Conv1d weight
    returns: (N, C_out, L_out)
    """
    n, c_in, l = x.shape
    c_out, c_in_w, k = w_orig.shape
    if c_in_w != c_in:
        raise ValueError("grouped Conv1d (groups != 1) is not supported")
    r = w_a.shape[0]
    l_out = (l + 2 * padding - dilation * (k - 1) - 1) // stride + 1
    l_pad = l + 2 * padding

    # ---- Fold LoRA into the frozen weight (exact because dropout == Identity). --
    w_b_flat = w_b.reshape(c_out, r)                             # (C_out, r)
    delta = jnp.einsum("or,rck->ock", w_b_flat, w_a)             # (C_out, C_in, K)
    w_eff = w_orig + scaling * delta                             # (C_out, C_in, K)
    w_eff_k = jnp.transpose(w_eff, (2, 0, 1))                    # (K, C_out, C_in)
    bias_col = b_orig.reshape(c_out, 1)

    x_pad = jnp.pad(x, ((0, 0), (0, 0), (padding, padding))) if padding else x

    kernel = functools.partial(_lora_conv1d_kernel, kernel_size=k,
                               stride=stride, dilation=dilation)

    itemsize = x.dtype.itemsize
    flops = 2 * n * c_out * c_in * k * l_out
    bytes_accessed = int(
        (x_pad.size + w_eff_k.size + bias_col.size + n * c_out * l_out)
        * itemsize)

    out = pl.pallas_call(
        kernel,
        out_shape=jax.ShapeDtypeStruct((n, c_out, l_out), x.dtype),
        grid=(n,),
        in_specs=[
            # per-sample input row, pipelined across the batch grid
            pl.BlockSpec((None, c_in, l_pad), lambda i: (i, 0, 0)),
            # folded weight + bias: constant index -> stay resident in VMEM
            pl.BlockSpec((k, c_out, c_in), lambda i: (0, 0, 0)),
            pl.BlockSpec((c_out, 1), lambda i: (0, 0)),
        ],
        out_specs=pl.BlockSpec((None, c_out, l_out), lambda i: (i, 0, 0)),
        compiler_params=pltpu.CompilerParams(
            dimension_semantics=("parallel",),
            vmem_limit_bytes=48 * 1024 * 1024,   # safe on v5e/v6e and v7x (64 MiB)
        ),
        cost_estimate=pl.CostEstimate(flops=flops, transcendentals=0,
                                      bytes_accessed=bytes_accessed),
    )(x_pad, w_eff_k, bias_col)

    return out  # already (N, C_out, L_out): no wrapper-side transpose needed


def _reference_forward(x, w_orig, b_orig, w_a, w_b, *, stride, padding,
                       dilation, scaling):
    """Pure-JAX reference (lax conv) mirroring the torch forward (unfused)."""
    dn = jax.lax.conv_dimension_numbers(x.shape, w_orig.shape,
                                        ("NCH", "OIH", "NCH"))
    base = jax.lax.conv_general_dilated(
        x, w_orig, window_strides=(stride,), padding=[(padding, padding)],
        rhs_dilation=(dilation,), dimension_numbers=dn)
    base = base + b_orig[None, :, None]
    a = jax.lax.conv_general_dilated(
        x, w_a, window_strides=(stride,), padding=[(padding, padding)],
        rhs_dilation=(dilation,), dimension_numbers=dn)
    dn_b = jax.lax.conv_dimension_numbers(a.shape, w_b.shape,
                                          ("NCH", "OIH", "NCH"))
    lora = jax.lax.conv_general_dilated(
        a, w_b, window_strides=(1,), padding=[(0, 0)], dimension_numbers=dn_b)
    return base + lora * scaling


if __name__ == "__main__":
    # Small, module-consistent shapes.
    N, C_IN, L = 2, 4, 16
    C_OUT, K = 8, 3
    STRIDE, PADDING, DILATION = 1, 1, 1
    R, ALPHA = 4, 16
    SCALING = ALPHA / R                     # = 4.0, LoRAConfig defaults

    key = jax.random.PRNGKey(0)
    kx, kw, kb, ka, kbb = jax.random.split(key, 5)

    x = jax.random.normal(kx, (N, C_IN, L), dtype=jnp.float32)

    # Frozen base Conv1d params (torch-style uniform init).
    fan_in = C_IN * K
    bound = 1.0 / math.sqrt(fan_in)
    w_orig = jax.random.uniform(kw, (C_OUT, C_IN, K), jnp.float32, -bound, bound)
    b_orig = jax.random.uniform(kb, (C_OUT,), jnp.float32, -bound, bound)

    # lora_A: kaiming_uniform_(a=sqrt(5)) -> U(-1/sqrt(fan_in), 1/sqrt(fan_in)).
    w_a = jax.random.uniform(ka, (R, C_IN, K), jnp.float32, -bound, bound)
    # lora_B: zeros at module init.
    w_b_init = jnp.zeros((C_OUT, R, 1), dtype=jnp.float32)
    # Also check a "trained" non-zero adapter so the weight fold is exercised.
    w_b_trained = jax.random.uniform(kbb, (C_OUT, R, 1), jnp.float32, -0.5, 0.5)

    for w_b in (w_b_init, w_b_trained):
        out = lora_conv1d_forward(x, w_orig, b_orig, w_a, w_b,
                                  stride=STRIDE, padding=PADDING,
                                  dilation=DILATION, scaling=SCALING)
        out = jax.block_until_ready(out)
        ref = _reference_forward(x, w_orig, b_orig, w_a, w_b,
                                 stride=STRIDE, padding=PADDING,
                                 dilation=DILATION, scaling=SCALING)
        assert out.shape == (N, C_OUT, L), out.shape
        assert jnp.allclose(out, ref, atol=1e-5, rtol=1e-5), \
            "mismatch vs reference"

    print("KERNEL_OK")
</pallas_src>

<mosaic_0001>
module attributes {stable_mosaic.version = 11 : i64} {
  func.func @_lora_conv1d_kernel(%arg0: i32, %arg1: memref<1x4x18xf32, #tpu.memory_space<vmem>>, %arg2: memref<3x8x4xf32, #tpu.memory_space<vmem>>, %arg3: memref<8x1xf32, #tpu.memory_space<vmem>>, %arg4: memref<1x8x16xf32, #tpu.memory_space<vmem>>) attributes {dimension_semantics = [#tpu.dimension_semantics<parallel>], iteration_bounds = array<i64: 2>, scalar_prefetch = 0 : i64, scratch_operands = 0 : i64, tpu.core_type = #tpu.core_type<tc>, window_params = [{transform_indices = @transform_0, window_bounds = array<i64: 1, 4, 18>}, {pipeline_mode = #tpu.pipeline_mode<synchronous>, transform_indices = @transform_1, window_bounds = array<i64: 3, 8, 4>}, {pipeline_mode = #tpu.pipeline_mode<synchronous>, transform_indices = @transform_2, window_bounds = array<i64: 8, 1>}, {transform_indices = @transform_3, window_bounds = array<i64: 1, 8, 16>}]} {
    %c0 = arith.constant 0 : index
    %c0_0 = arith.constant 0 : index
    %c0_1 = arith.constant 0 : index
    %0 = vector.load %arg1[%c0, %c0_0, %c0_1] : memref<1x4x18xf32, #tpu.memory_space<vmem>>, vector<1x4x18xf32>
    %1 = vector.shape_cast %0 : vector<1x4x18xf32> to vector<4x18xf32>
    %cst = arith.constant 0.000000e+00 : f32
    %2 = vector.broadcast %cst : f32 to vector<8x16xf32>
    %3 = vector.extract_strided_slice %1 {offsets = [0, 0], sizes = [4, 16], strides = [1, 1]} : vector<4x18xf32> to vector<4x16xf32>
    %c0_2 = arith.constant 0 : index
    %c0_3 = arith.constant 0 : index
    %c0_4 = arith.constant 0 : index
    %4 = vector.load %arg2[%c0_2, %c0_3, %c0_4] : memref<3x8x4xf32, #tpu.memory_space<vmem>>, vector<1x8x4xf32>
    %5 = vector.shape_cast %4 : vector<1x8x4xf32> to vector<8x4xf32>
    %cst_5 = arith.constant dense<0.000000e+00> : vector<8x16xf32>
    %6 = tpu.matmul %5, %3, %cst_5 {dimension_numbers = #tpu.dot_dimension_numbers<[1], [0], [0], [1], [0, 0, 1, 1], [], []>} : vector<8x4xf32>, vector<4x16xf32>, vector<8x16xf32> -> vector<8x16xf32>
    %7 = arith.addf %2, %6 : vector<8x16xf32>
    %8 = vector.extract_strided_slice %1 {offsets = [0, 1], sizes = [4, 16], strides = [1, 1]} : vector<4x18xf32> to vector<4x16xf32>
    %c1 = arith.constant 1 : index
    %c0_6 = arith.constant 0 : index
    %c0_7 = arith.constant 0 : index
    %9 = vector.load %arg2[%c1, %c0_6, %c0_7] : memref<3x8x4xf32, #tpu.memory_space<vmem>>, vector<1x8x4xf32>
    %10 = vector.shape_cast %9 : vector<1x8x4xf32> to vector<8x4xf32>
    %cst_8 = arith.constant dense<0.000000e+00> : vector<8x16xf32>
    %11 = tpu.matmul %10, %8, %cst_8 {dimension_numbers = #tpu.dot_dimension_numbers<[1], [0], [0], [1], [0, 0, 1, 1], [], []>} : vector<8x4xf32>, vector<4x16xf32>, vector<8x16xf32> -> vector<8x16xf32>
    %12 = arith.addf %7, %11 : vector<8x16xf32>
    %13 = vector.extract_strided_slice %1 {offsets = [0, 2], sizes = [4, 16], strides = [1, 1]} : vector<4x18xf32> to vector<4x16xf32>
    %c2 = arith.constant 2 : index
    %c0_9 = arith.constant 0 : index
    %c0_10 = arith.constant 0 : index
    %14 = vector.load %arg2[%c2, %c0_9, %c0_10] : memref<3x8x4xf32, #tpu.memory_space<vmem>>, vector<1x8x4xf32>
    %15 = vector.shape_cast %14 : vector<1x8x4xf32> to vector<8x4xf32>
    %cst_11 = arith.constant dense<0.000000e+00> : vector<8x16xf32>
    %16 = tpu.matmul %15, %13, %cst_11 {dimension_numbers = #tpu.dot_dimension_numbers<[1], [0], [0], [1], [0, 0, 1, 1], [], []>} : vector<8x4xf32>, vector<4x16xf32>, vector<8x16xf32> -> vector<8x16xf32>
    %17 = arith.addf %12, %16 : vector<8x16xf32>
    %c0_12 = arith.constant 0 : index
    %c0_13 = arith.constant 0 : index
    %18 = vector.load %arg3[%c0_12, %c0_13] : memref<8x1xf32, #tpu.memory_space<vmem>>, vector<8x1xf32>
    %19 = vector.broadcast %18 : vector<8x1xf32> to vector<8x16xf32>
    %20 = arith.addf %17, %19 : vector<8x16xf32>
    %c0_14 = arith.constant 0 : index
    %c0_15 = arith.constant 0 : index
    %c0_16 = arith.constant 0 : index
    %21 = vector.load %arg4[%c0_14, %c0_15, %c0_16] : memref<1x8x16xf32, #tpu.memory_space<vmem>>, vector<1x8x16xf32>
    %22 = vector.shape_cast %21 : vector<1x8x16xf32> to vector<8x16xf32>
    %23 = vector.shape_cast %20 : vector<8x16xf32> to vector<1x8x16xf32>
    tpu.vector_store %arg4[%c0_14, %c0_15, %c0_16], %23 {strides = array<i32>} : memref<1x8x16xf32, #tpu.memory_space<vmem>>, vector<1x8x16xf32>,
    return
  }
  func.func @transform_0(%arg0: i32) -> (i32, i32, i32) {
    %c0_i32 = arith.constant 0 : i32
    %c0_i32_0 = arith.constant 0 : i32
    %c0_i32_1 = arith.constant 0 : i32
    return %arg0, %c0_i32, %c0_i32_0 : i32, i32, i32
  }
  func.func @transform_1(%arg0: i32) -> (i32, i32, i32) {
    %c0_i32 = arith.constant 0 : i32
    %c0_i32_0 = arith.constant 0 : i32
    %c0_i32_1 = arith.constant 0 : i32
    %c0_i32_2 = arith.constant 0 : i32
    return %c0_i32, %c0_i32_0, %c0_i32_1 : i32, i32, i32
  }
  func.func @transform_2(%arg0: i32) -> (i32, i32) {
    %c0_i32 = arith.constant 0 : i32
    %c0_i32_0 = arith.constant 0 : i32
    %c0_i32_1 = arith.constant 0 : i32
    return %c0_i32, %c0_i32_0 : i32, i32
  }
  func.func @transform_3(%arg0: i32) -> (i32, i32, i32) {
    %c0_i32 = arith.constant 0 : i32
    %c0_i32_0 = arith.constant 0 : i32
    %c0_i32_1 = arith.constant 0 : i32
    return %arg0, %c0_i32, %c0_i32_0 : i32, i32, i32
  }
}

</mosaic_0001>

<bundles_post_ra>
// kernel: tpu_custom_call.1
= control target key start
LH: loop header
LB: loop body
LE: loop exit
PB: predicated region body
PF: predicated region fallthrough
CT: control target
= control target key end

     0   :  { %8 = vsyncpa [#allocation3], 0  ;;  %s588_s0 = inlined_call_operand.vmem [shape: f32[2,4,18], index: 0, kind: input, shape index: {}]   ;;  %s589_s1 = inlined_call_operand.vmem [shape: f32[3,8,4], index: 1, kind: input, shape index: {}]   ;;  %s590_s2 = inlined_call_operand.vmem [shape: f32[8,1], index: 2, kind: input, shape index: {}]   ;;  %s591_s3 = inlined_call_operand.hbm [shape: f32[2,8,16], index: 3, kind: output, shape index: {}]  }
   0x1   :  { %10 = vsyncpa [#allocation3 + $0x1], 0  ;;  %s488_s12 = smov 0   ;;  %s490_s13 = smov 0  }
   0x2   :  { %s492_s14 = smov 0   ;;  %s494_s15 = smov 0  }
   0x3 LB: > { %s509_s16 = sadd.s32 4294967295, %s463_s15   ;;  %s339_s17 = sadd.s32 4294967294, %s463_s15   ;;  %s463_s15 = sphi %s494_s15, %s597_s15   ;;  %s459_s14 = sphi %s492_s14, %s596_s14   ;;  %s455_s13 = sphi %s490_s13, %s595_s13   ;;  %s451_s12 = sphi %s488_s12, %s594_s12  }
   0x4   : > { %s513_s18 = sadd.s32 1, %s463_s15   ;;  %s91_s19 = sadd.s32 1, %s459_s14 }
   0x5   : > { %s88_s20 = ssub.s32 %s463_s15, %s513_s18  ;;  %p101_p0 = scmp.ne.s32.totalorder %s459_s14, %s455_s13 }
   0x6   : > { %p89_p1 = scmp.eq.s32.totalorder %s88_s20, 0  ;;  %p102_p2 = scmp.eq.s32.totalorder %s509_s16, 1 }
   0x7   : > { %p107_p3 = scmp.ne.s32.totalorder %s455_s13, %s451_s12  ;;  %p108_p4 = scmp.eq.s32.totalorder %s339_s17, 1 }
   0x8   : > { %s524_s21 = scalar_select %p89_p1, %s459_s14, %s91_s19  }
   0x9   : > { %p526_p5 = por %p102_p2, %p101_p0  ;;  %p530_p6 = por %p108_p4, %p107_p3 }
   0xa   : > { %p342_p7 = scmp.ge.s32.totalorder %s463_s15, 1  ;;  %p139_p8 = scmp.lt.s32.totalorder %s463_s15, 3 }
   0xc   : > { %p140_p9 = pnand %p342_p7, %p139_p8 }
   0xd   : > { %p162_p10 = scmp.lt.s32.totalorder (!%p140_p9), %s509_s16, 1  ;;  %s465_s29 = smov (!%p140_p9), 126  }
   0xe   : > { %143 = sbr.rel (%p140_p9) target bundleno = 283 (0x11b), region = 32  ;;  %s466_s30 = smov (!%p140_p9), 127  }
   0xf   : > { %s159_s17 = sand.u32 (!%p140_p9), 1, %s455_s13   ;;  %s354_s20 = sshll.u32 (!%p140_p9), %s509_s16, 3 }
  0x10   : > { %s343_s19 = sshll.u32 (!%p140_p9), %s159_s17, 3  ;;  %s275_s26 = scalar_lea.hbm (!%p140_p9), %s591_s3, %s354_s20 }
  0x11   : > { %s161_s27 = scalar_lea.vmem (!%p140_p9), [#allocation2], %s343_s19  ;;  %s421_s7 = scalar_lea.hbm (!%p140_p9), %s591_s3, 16 }
  0x13   : > { %s163_s24 = scalar_select %p162_p10, %s509_s16, 1  ;;  %vm177_vm0 = vcmask 1043456   ;;  %vm173_vm1 = vcmask 31744   ;;  %v167_v1 = vld [vmem:[%s589_s1] sm:$0xff]  ;;  %v467_v3 = vmov 0   ;;  %v350_v4 = vld [vmem:[%s589_s1 + $0x10] sm:$0xff] }
  0x14   : > { %v255_v2 = vld [vmem:[%s590_s2] sm:$0xff]  ;;  %399 = vset.pattern.permute.xlu1 %v467_v3  ;;  %400 = vset.pattern.permute.xlu0 %v467_v3  ;;  %v345_v6 = vld [vmem:[%s589_s1 + $0x8] sm:$0xff]  ;;  %vm262_vm2 = vcmask 130048   ;;  %s265_s16 = scalar_lea.sflag [#allocation3], %s159_s17 }
  0x15   : > { %s344_s25 = sshll.u32 %s163_s24, 2  ;;  %258 = vperm.xlu1 %399, %v255_v2  }
  0x16   : > { %s165_s28 = scalar_lea.vmem %s588_s0, %s344_s25 }
  0x17   : > { %v166_v0 = vld [vmem:[%s165_s28] sm:$0xf]  ;;  %s277_s28 = sshll.u32 %s161_s27, 4  ;;  %s278_s28 = int_to_ptr.vmem [resolvable:$true] %s277_s28 }
  0x18   : > { %227 = vrot.lane.b32.xlu0 %v166_v0, %s465_s29  ;;  %348 = vmatpush.msk.msra.mxu1 %vm177_vm0, %v166_v0  ;;  %s279_s29 = sshll.u32 %s275_s26, 4  ;;  %s280_s29 = int_to_ptr.hbm [resolvable:$true] %s279_s29 }
  0x19   : > { %349 = vmatmul.msk.f32.vlgmr.msra.gmra.mxu1 %vm173_vm1, %v167_v1 }
  0x20   : > { %171 = vrot.lane.b32.xlu0 %v166_v0, %s466_s30  ;;  %s415_s30 = sshra.s32 %s280_s29, 4  ;;  %s416_s30 = int_to_ptr.hbm [resolvable:$true] %s415_s30 }
  0x21   : > { %s417_s4 = scalar_lea.hbm %s416_s30, 8  ;;  %p422_p0 = scmp.lt.s32.totalorder %s416_s30, %s591_s3 }
  0x22   : > { %p418_p11 = scmp.ne.s32.totalorder %s416_s30, %s417_s4  ;;  %p423_p1 = scmp.lt.s32.totalorder %s421_s7, %s417_s4 }
  0x24   : > { %p419_p12 = pnand %p418_p11, %p526_p5  ;;  %p424_p2 = por %p423_p1, %p422_p0 }
  0x26   : > { %p420_p13 = pneg %p419_p12 }
  0x28   : > { %p425_p3 = pnand %p424_p2, %p420_p13 }
  0x87   : > { %v259_v12 = vpop.permute.xlu1 %258 }
  0x8a   : > { %v228_v5 = vpop.permute.xlu0 %227 }
  0x8b   : > { %351 = vmatpush.msk.msra.mxu2 %vm177_vm0, %v228_v5 }
  0x8c   : > { %352 = vmatmul.msk.f32.vlgmr.msra.gmra.mxu2 %vm173_vm1, %v350_v4 }
  0x92   : > { %v172_v7 = vpop.permute.xlu0 %171 }
  0x93   : > { %346 = vmatpush.msk.msra.mxu0 %vm177_vm0, %v172_v7 }
  0x94   : > { %347 = vmatmul.msk.f32.vlgmr.msra.gmra.mxu0 %vm173_vm1, %v345_v6 }
  0x96   : > { %v222_v8 = vpop.f32.mrf.mxu1 }
 0x10f   : > { %v251_v10 = vpop.f32.mrf.mxu2 }
 0x111   : > { %v197_v9 = vpop.f32.mrf.mxu0 }
 0x112   : > { %v223_v11 = vadd.f32 %v222_v8, %v197_v9 }
 0x114   : > { %v254_v13 = vadd.f32 %v251_v10, %v223_v11 }
 0x116   : > { %v261_v14 = vadd.f32 %v259_v12, %v254_v13 }
 0x118   : > { %263 = vst.msk [vmem:[%s161_s27] sm:$0xff] %vm262_vm2, %v261_v14 }
 0x119   : > { %428 = shalt.err (!%p425_p3)
}
 0x11a   : > { %357 = dma.vmem_to_hbm [thread:$0]  (%p526_p5), %s278_s28, 128, %s280_s29, %s265_s16  }
 0x11b PF: > { %p363_p4 = scmp.ge.s32.totalorder %s463_s15, 2  ;;  %s291_s10 = sand.u32 1, %s451_s12  }
 0x11c   : > { %s292_s11 = scalar_lea.sflag [#allocation3], %s291_s10 }
 0x11d   : > { %p360_p7 = pnand %p363_p4, %p530_p6 }
 0x11f   : > { %p361_p8 = pneg %p360_p7 }
 0x121   : > { %446 = dma.done.wait (%p361_p8), %s292_s11, 128  }
 0x122   : > { %448 = vsyncadd (%p361_p8), %s292_s11, 4294967168  ;;  %p13_p9 = scmp.ge.s32.totalorder %s513_s18, 4   ;;  %s594_s12 = smov %s455_s13 }
 0x123   : > { %s595_s13 = smov %s459_s14  ;;  %s596_s14 = smov %s524_s21 }
 0x124   : > { %s597_s15 = smov %s513_s18  ;;  %15 = sbr.rel (!%p13_p9) target bundleno = 3 (0x3), region = 69 }
 0x129   :  { %298 = vsyncpa [#allocation3], 1 }
 0x12a   :  { %300 = vsyncpa [#allocation3 + $0x1], 1 }

</bundles_post_ra>
